<compile_context>
chip_gen: v6e
topology: v6e:2x2x1
jax: 0.10.0
libtpu: 0.0.40
codegen_flags: <defaults>
</compile_context>

<pallas_src>
import functools

import jax
import jax.numpy as jnp
from jax import lax
from jax.experimental import pallas as pl
from jax.experimental.pallas import tpu as pltpu


def _logits_epilogue(z, linw_ref, linb_ref, out_ref, use_bf16):
    """z: [1, H] f32  ->  out_ref[(8, LP)] = z @ W + b (replicated on sublanes)."""
    if use_bf16:
        z = z.astype(jnp.bfloat16)          # MXU operand only; accumulation stays f32
    logits = jnp.dot(z, linw_ref[...], preferred_element_type=jnp.float32)
    logits = logits + linb_ref[...]                                   # [1, LP] f32
    out_ref[...] = jnp.broadcast_to(logits, out_ref.shape)


def leam_fast_kernel(enc_ref, linw_ref, linb_ref, out_ref, *, use_bf16):
    """Default path: softmax over a size-1 axis is identically 1.0, so the
    attention-weighted sum over the sequence reduces to a plain sum over S."""
    enc = enc_ref[...]                                                # [S, H] f32
    z = jnp.sum(enc, axis=0, keepdims=True)                           # [1, H]
    _logits_epilogue(z, linw_ref, linb_ref, out_ref, use_bf16)


def leam_full_kernel(enc_ref, lab_ref, convw_ref, convb_ref, linw_ref, linb_ref,
                     out_ref, gpad_ref, *, radius, n_labels, use_bf16):
    """Literal (flag-guarded) translation of the G / conv / ReLU / maxpool /
    softmax path.  Output-equivalent to the fast kernel for finite inputs."""
    S = enc_ref.shape[0]
    Lp = lab_ref.shape[0]
    K = 2 * radius + 1

    enc = enc_ref[...]                                                # [S, H]  f32
    lab = lab_ref[...]                                                # [Lp, H] f32

    # Cosine normalization folded into the matmul operands (rsqrt -> EUP).
    enc_ss = jnp.sum(enc * enc, axis=-1, keepdims=True)               # [S, 1]
    lab_ss = jnp.sum(lab * lab, axis=-1, keepdims=True)               # [Lp, 1]
    enc_s = enc * lax.rsqrt(enc_ss)
    lab_s = lab * jnp.where(lab_ss > 0.0, lax.rsqrt(lab_ss), 0.0)     # guard padded rows

    if use_bf16:
        enc_s = enc_s.astype(jnp.bfloat16)
        lab_s = lab_s.astype(jnp.bfloat16)

    # G[l, s] = <lab_s[l], enc_s[s]>  (single [Lp,H] x [S,H]^T matmul, no broadcasts).
    G = lax.dot_general(lab_s, enc_s, (((1,), (1,)), ((), ())),
                        preferred_element_type=jnp.float32)           # [Lp, S]

    # Shared Conv1d(kernel=K, padding=radius) along the sequence axis as K
    # shifted adds through a zero-padded VMEM scratch (no band matmul).
    gpad_ref[...] = jnp.zeros_like(gpad_ref)
    gpad_ref[:, radius:radius + S] = G
    conv = jnp.full((Lp, S), convb_ref[0], dtype=jnp.float32)
    for k in range(K):                                                # static unroll
        conv = conv + convw_ref[k] * gpad_ref[:, k:k + S]
    res = jnp.maximum(conv, 0.0)                                      # ReLU  [Lp, S]

    # MaxPool1d(n_labels) over the label axis (mask any sublane padding rows).
    if Lp > n_labels:
        row = lax.broadcasted_iota(jnp.int32, (Lp, S), 0)
        res = jnp.where(row < n_labels, res, -jnp.inf)
    att = jnp.max(res, axis=0, keepdims=True)                         # [1, S]

    # softmax over a size-1 axis, kept literal (== 1.0 for finite inputs).
    e = jnp.exp(att - att)
    attw = e * pl.reciprocal(e)                                       # [1, S]

    z = jnp.dot(attw, enc, preferred_element_type=jnp.float32)        # [1, H]
    _logits_epilogue(z, linw_ref, linb_ref, out_ref, use_bf16)


def leam_bert_head(encoded, label_embed, conv_w, conv_b, lin_w, lin_b, radius,
                   *, fast=True, use_bf16=False):
    """encoded: [B,S,H]; label_embed: [L,H]; conv_w: [2r+1]; conv_b: [1];
    lin_w: [H,L]; lin_b: [L]  ->  logits [B,L]."""
    encoded = encoded.astype(jnp.float32)
    B, S, H = encoded.shape
    L = label_embed.shape[0]
    K = 2 * radius + 1

    LP = ((L + 127) // 128) * 128        # lane-dense logits width (pad L -> mult of 128)
    Lp = ((L + 7) // 8) * 8              # sublane-padded label count

    mxu_dtype = jnp.bfloat16 if use_bf16 else jnp.float32
    lin_w_p = (jnp.zeros((H, LP), jnp.float32)
               .at[:, :L].set(lin_w.astype(jnp.float32)).astype(mxu_dtype))
    lin_b_p = jnp.zeros((1, LP), jnp.float32).at[0, :L].set(lin_b.astype(jnp.float32))

    enc_spec = pl.BlockSpec((None, S, H), lambda b: (b, 0, 0))
    linw_spec = pl.BlockSpec((H, LP), lambda b: (0, 0))     # constant index -> fetched once
    linb_spec = pl.BlockSpec((1, LP), lambda b: (0, 0))
    # Output written as an (8, LP) sublane/lane-dense slab per batch row; row 0
    # holds the logits and is sliced out below (unmasked lane-dense stores).
    out_spec = pl.BlockSpec((None, 8, LP), lambda b: (b, 0, 0))
    out_shape = jax.ShapeDtypeStruct((B, 8, LP), jnp.float32)

    cparams = pltpu.CompilerParams(
        dimension_semantics=("parallel",),        # multi-TC chips split the batch
        vmem_limit_bytes=32 * 1024 * 1024)

    if fast:
        out = pl.pallas_call(
            functools.partial(leam_fast_kernel, use_bf16=use_bf16),
            out_shape=out_shape,
            grid=(B,),
            in_specs=[enc_spec, linw_spec, linb_spec],
            out_specs=out_spec,
            compiler_params=cparams,
        )(encoded, lin_w_p, lin_b_p)
    else:
        lab_p = (jnp.zeros((Lp, H), jnp.float32)
                 .at[:L, :].set(label_embed.astype(jnp.float32)))
        conv_w_1d = conv_w.astype(jnp.float32).reshape(K)
        conv_b_1d = conv_b.astype(jnp.float32).reshape(1)
        lab_spec = pl.BlockSpec((Lp, H), lambda b: (0, 0))
        smem_spec = pl.BlockSpec(memory_space=pltpu.MemorySpace.SMEM)
        out = pl.pallas_call(
            functools.partial(leam_full_kernel, radius=radius, n_labels=L,
                              use_bf16=use_bf16),
            out_shape=out_shape,
            grid=(B,),
            in_specs=[enc_spec, lab_spec, smem_spec, smem_spec,
                      linw_spec, linb_spec],
            out_specs=out_spec,
            scratch_shapes=[pltpu.VMEM((Lp, S + 2 * radius), jnp.float32)],
            compiler_params=cparams,
        )(encoded, lab_p, conv_w_1d, conv_b_1d, lin_w_p, lin_b_p)

    return out[:, 0, :L]


def reference_forward(encoded, label_embed, conv_w, conv_b, lin_w, lin_b, radius):
    """Pure-JAX mirror of the PyTorch forward (post-BERT, eval mode)."""
    B, S, H = encoded.shape
    K = 2 * radius + 1
    G = jnp.einsum('lh,bsh->bls', label_embed, encoded)
    G = G / (jnp.linalg.norm(label_embed, axis=-1)[None, :, None]
             * jnp.linalg.norm(encoded, axis=-1)[:, None, :])
    Gp = jnp.pad(G, ((0, 0), (0, 0), (radius, radius)))
    conv = conv_b[0] + sum(conv_w[k] * Gp[..., k:k + S] for k in range(K))
    res = jnp.maximum(conv, 0.0)
    att = jax.nn.softmax(jnp.max(res, axis=1)[..., None], axis=-1)   # [B,S,1] -> ones
    z = jnp.sum(att * encoded, axis=1)
    return z @ lin_w + lin_b


if __name__ == "__main__":
    emotions = ["joy", "sadness", "anger", "fear",
                "surprise", "disgust", "trust", "anticipation"]
    L = len(emotions)            # n_labels
    B, S, H = 2, 8, 768          # batch, seq, BERT hidden (Linear hardcodes 768)
    radius = 2
    K = 2 * radius + 1
    vocab, n_types = 50, 2

    key = jax.random.PRNGKey(0)
    keys = jax.random.split(key, 8)
    word_emb = 0.02 * jax.random.normal(keys[0], (vocab, H), jnp.float32)
    pos_emb = 0.02 * jax.random.normal(keys[1], (S, H), jnp.float32)
    type_emb = 0.02 * jax.random.normal(keys[2], (n_types, H), jnp.float32)
    conv_w = 0.3 * jax.random.normal(keys[3], (K,), jnp.float32)     # Conv1d(1,1,K) weight
    conv_b = 0.1 * jax.random.normal(keys[4], (1,), jnp.float32)     # Conv1d bias
    lin_w = 0.05 * jax.random.normal(keys[5], (H, L), jnp.float32)   # Linear(768, L), pre-T
    lin_b = 0.05 * jax.random.normal(keys[6], (L,), jnp.float32)

    # emotion_label_embeddings: rows of the word-embedding table at the label token ids
    label_ids = jnp.arange(L) + 10
    label_embed = word_emb[label_ids]                                # [L, H]

    input_ids = jax.random.randint(keys[7], (B, S), 0, vocab)
    input_mask = jnp.ones((B, S), jnp.int32)                         # stub ignores mask
    seg_ids = jnp.zeros((B, S), jnp.int32)

    # Deterministic embedding + layernorm stub in place of bert_model(...)[0].
    x = word_emb[input_ids] + pos_emb[None] + type_emb[seg_ids]
    mu = jnp.mean(x, axis=-1, keepdims=True)
    var = jnp.var(x, axis=-1, keepdims=True)
    encoded = (x - mu) / jnp.sqrt(var + 1e-12)                       # [B, S, H]
    # nn.Dropout(p=0.2) is eval-mode identity.

    # bf16 MXU operands on newer chips; keep everything f32 on v2-v5e.
    try:
        kind = jax.devices()[0].device_kind.lower()
        use_bf16 = not any(t in kind for t in
                           ("v2", "v3", "v4", "v5 lite", "v5lite", "v5e"))
    except Exception:  # pragma: no cover - defensive
        use_bf16 = False

    args = (encoded, label_embed, conv_w, conv_b, lin_w, lin_b, radius)
    out_fast = jax.block_until_ready(
        leam_bert_head(*args, fast=True, use_bf16=use_bf16))
    out_full = jax.block_until_ready(
        leam_bert_head(*args, fast=False, use_bf16=use_bf16))
    ref = reference_forward(*args)

    tol = dict(atol=1e-1, rtol=5e-2) if use_bf16 else dict(atol=2e-2, rtol=2e-2)
    assert out_fast.shape == (B, L), out_fast.shape
    assert out_full.shape == (B, L), out_full.shape
    assert jnp.allclose(out_fast, ref, **tol), (out_fast, ref)
    assert jnp.allclose(out_full, ref, **tol), (out_full, ref)
    assert jnp.allclose(out_fast, out_full, **tol), (out_fast, out_full)
    print("KERNEL_OK")
</pallas_src>

<mosaic_0001>
module attributes {stable_mosaic.version = 11 : i64} {
  func.func @leam_fast_kernel(%arg0: i32, %arg1: memref<1x8x768xf32, #tpu.memory_space<vmem>>, %arg2: memref<768x128xbf16, #tpu.memory_space<vmem>>, %arg3: memref<1x128xf32, #tpu.memory_space<vmem>>, %arg4: memref<1x8x128xf32, #tpu.memory_space<vmem>>) attributes {dimension_semantics = [#tpu.dimension_semantics<parallel>], iteration_bounds = array<i64: 2>, scalar_prefetch = 0 : i64, scratch_operands = 0 : i64, tpu.core_type = #tpu.core_type<tc>, window_params = [{transform_indices = @transform_0, window_bounds = array<i64: 1, 8, 768>}, {pipeline_mode = #tpu.pipeline_mode<synchronous>, transform_indices = @transform_1, window_bounds = array<i64: 768, 128>}, {pipeline_mode = #tpu.pipeline_mode<synchronous>, transform_indices = @transform_2, window_bounds = array<i64: 1, 128>}, {transform_indices = @transform_3, window_bounds = array<i64: 1, 8, 128>}]} {
    %c0 = arith.constant 0 : index
    %c0_0 = arith.constant 0 : index
    %c0_1 = arith.constant 0 : index
    %0 = vector.load %arg1[%c0, %c0_0, %c0_1] : memref<1x8x768xf32, #tpu.memory_space<vmem>>, vector<1x8x768xf32>
    %1 = vector.shape_cast %0 : vector<1x8x768xf32> to vector<8x768xf32>
    %cst = arith.constant dense<0.000000e+00> : vector<768xf32>
    %2 = vector.multi_reduction <add>, %1, %cst [0] : vector<8x768xf32> to vector<768xf32>
    %3 = vector.shape_cast %2 : vector<768xf32> to vector<1x768xf32>
    %4 = arith.truncf %3 : vector<1x768xf32> to vector<1x768xbf16>
    %c0_2 = arith.constant 0 : index
    %c0_3 = arith.constant 0 : index
    %5 = vector.load %arg2[%c0_2, %c0_3] : memref<768x128xbf16, #tpu.memory_space<vmem>>, vector<768x128xbf16>
    %cst_4 = arith.constant dense<0.000000e+00> : vector<1x128xf32>
    %6 = tpu.matmul %4, %5, %cst_4 {dimension_numbers = #tpu.dot_dimension_numbers<[1], [0], [0], [1], [0, 0, 1, 1], [], []>} : vector<1x768xbf16>, vector<768x128xbf16>, vector<1x128xf32> -> vector<1x128xf32>
    %c0_5 = arith.constant 0 : index
    %c0_6 = arith.constant 0 : index
    %7 = vector.load %arg3[%c0_5, %c0_6] : memref<1x128xf32, #tpu.memory_space<vmem>>, vector<1x128xf32>
    %8 = arith.addf %6, %7 : vector<1x128xf32>
    %9 = vector.shape_cast %8 : vector<1x128xf32> to vector<1x128xf32>
    %10 = vector.broadcast %9 : vector<1x128xf32> to vector<8x128xf32>
    %c0_7 = arith.constant 0 : index
    %c0_8 = arith.constant 0 : index
    %c0_9 = arith.constant 0 : index
    %11 = vector.load %arg4[%c0_7, %c0_8, %c0_9] : memref<1x8x128xf32, #tpu.memory_space<vmem>>, vector<1x8x128xf32>
    %12 = vector.shape_cast %11 : vector<1x8x128xf32> to vector<8x128xf32>
    %13 = vector.shape_cast %10 : vector<8x128xf32> to vector<1x8x128xf32>
    tpu.vector_store %arg4[%c0_7, %c0_8, %c0_9], %13 {strides = array<i32>} : memref<1x8x128xf32, #tpu.memory_space<vmem>>, vector<1x8x128xf32>,
    return
  }
  func.func @transform_0(%arg0: i32) -> (i32, i32, i32) {
    %c0_i32 = arith.constant 0 : i32
    %c0_i32_0 = arith.constant 0 : i32
    %c0_i32_1 = arith.constant 0 : i32
    return %arg0, %c0_i32, %c0_i32_0 : i32, i32, i32
  }
  func.func @transform_1(%arg0: i32) -> (i32, i32) {
    %c0_i32 = arith.constant 0 : i32
    %c0_i32_0 = arith.constant 0 : i32
    %c0_i32_1 = arith.constant 0 : i32
    return %c0_i32, %c0_i32_0 : i32, i32
  }
  func.func @transform_2(%arg0: i32) -> (i32, i32) {
    %c0_i32 = arith.constant 0 : i32
    %c0_i32_0 = arith.constant 0 : i32
    %c0_i32_1 = arith.constant 0 : i32
    return %c0_i32, %c0_i32_0 : i32, i32
  }
  func.func @transform_3(%arg0: i32) -> (i32, i32, i32) {
    %c0_i32 = arith.constant 0 : i32
    %c0_i32_0 = arith.constant 0 : i32
    %c0_i32_1 = arith.constant 0 : i32
    return %arg0, %c0_i32, %c0_i32_0 : i32, i32, i32
  }
}

</mosaic_0001>

<bundles_post_ra>
// kernel: tpu_custom_call.1
= control target key start
LH: loop header
LB: loop body
LE: loop exit
PB: predicated region body
PF: predicated region fallthrough
CT: control target
= control target key end

     0   :  { %8 = vsyncpa [#allocation3], 0  ;;  %s1406_s0 = inlined_call_operand.hbm [shape: f32[2,8,768], index: 0, kind: input, shape index: {}]   ;;  %s1407_s1 = inlined_call_operand.hbm [shape: bf16[768,128], index: 1, kind: input, shape index: {}]   ;;  %s1408_s2 = inlined_call_operand.vmem [shape: f32[1,128], index: 2, kind: input, shape index: {}]   ;;  %s1409_s3 = inlined_call_operand.hbm [shape: f32[2,8,128], index: 3, kind: output, shape index: {}]  }
   0x1   :  { %10 = vsyncpa [#allocation3 + $0x1], 0 }
   0x2   :  { %11 = vsyncpa [#allocation6], 0 }
   0x3   :  { %12 = vsyncpa [#allocation4], 0 }
   0x4   :  { %14 = vsyncpa [#allocation4 + $0x1], 0  ;;  %s1240_s12 = smov 0   ;;  %s1242_s13 = smov 0  }
   0x5   :  { %s1244_s14 = smov 0   ;;  %s1246_s15 = smov 0  }
   0x6 LB: > { %s1261_s16 = sadd.s32 4294967295, %s1213_s15   ;;  %s855_s17 = sadd.s32 4294967294, %s1213_s15   ;;  %s1213_s15 = sphi %s1246_s15, %s1431_s15   ;;  %s1209_s14 = sphi %s1244_s14, %s1430_s14   ;;  %s1205_s13 = sphi %s1242_s13, %s1429_s13   ;;  %s1201_s12 = sphi %s1240_s12, %s1428_s12  }
   0x7   : > { %p40_p0 = scmp.ne.s32.totalorder %s1205_s13, %s1201_s12  ;;  %p1410_p1 = scmp.eq.s32.totalorder %s1261_s16, 0 }
   0x8   : > { %p112_p3 = scmp.eq.s32.totalorder %s855_s17, 1  ;;  %p856_p5 = scmp.ge.s32.totalorder %s1213_s15, 1 }
   0x9   : > { %p1270_p4 = por %p1410_p1, %p40_p0  ;;  %p119_p7 = scmp.lt.s32.totalorder %s1213_s15, 3 }
   0xa   : > { %p1275_p6 = por %p112_p3, %p40_p0  ;;  %s1215_s21 = smov [#allocation5]  }
   0xb   : > { %s1414_s18 = scalar_select %p1270_p4, 1, 0 }
   0xc   : > { %s1415_s19 = scalar_select %p1275_p6, 1, 0 }
   0xd   : > { %p1280_p8 = pnand %p856_p5, %p119_p7  ;;  %s131_s22 = sshll.u32 %s1215_s21, 4  ;;  %s132_s22 = int_to_ptr.vmem [resolvable:$true] %s131_s22 }
   0xe   : > { %s1294_s24 = sadd.s32 1, %s1213_s15   ;;  %s27_s25 = sadd.s32 1, %s1209_s14 }
   0xf   : > { %s1416_s20 = scalar_select %p1280_p8, 1, 0 }
  0x10   : > { %p992_p9 = pneg %p1280_p8  ;;  %s24_s26 = ssub.s32 %s1213_s15, %s1294_s24 }
  0x11   : > { %s1102_s27 = scalar_lea.vmem %s132_s22, 6144  ;;  %p1110_p5 = scmp.lt.s32.totalorder %s132_s22, %s132_s22 }
  0x12   : > { %p1289_p11 = pnand %p992_p9, %p1410_p1  ;;  %p1103_p13 = scmp.ne.s32.totalorder %s132_s22, %s1102_s27 }
  0x13   : > { %p1111_p7 = scmp.lt.s32.totalorder %s1102_s27, %s1102_s27 }
  0x14   : > { %p1093_p12 = pneg %p1289_p11 }
  0x15   : > { %p1112_p10 = por %p1111_p7, %p1110_p5 }
  0x16   : > { %p1105_p0 = pnand %p1103_p13, %p1093_p12 }
  0x18   : > { %p1106_p3 = pneg %p1105_p0 }
  0x1a   : > { %p1113_p2 = pnand %p1112_p10, %p1106_p3 }
  0x1c   : > { %1116 = shalt.err (!%p1113_p2)
}
  0x1d   : > { %s1216_s28 = smov 64   ;;  %s1217_s29 = smov 4  }
  0x1e   : > { %995 = dma.hbm_to_vmem [thread:$0]  (!%p1289_p11), %s1407_s1, 6144, %s132_s22, [#allocation6], %s1216_s28, %s1216_s28, %s1217_s29  }
  0x1f   : > { %p25_p9 = scmp.eq.s32.totalorder %s24_s26, 0  ;;  %p34_p12 = scmp.ne.s32.totalorder %s1209_s14, %s1205_s13 }
  0x20   : > { %p35_p10 = scmp.eq.s32.totalorder %s1213_s15, 0  ;;  %p1005_p2 = scmp.lt.s32.totalorder %s1213_s15, 2 }
  0x21   : > { %s1311_s5 = scalar_select %p25_p9, %s1209_s14, %s27_s25  }
  0x22   : > { %p36_p13 = por %p35_p10, %p34_p12  ;;  %p1418_p0 = scmp.eq.s32.totalorder %s1261_s16, 1 }
  0x23   : > { %s148_s7 = sand.u32 1, %s1209_s14   ;;  %s982_s8 = smul.u32 768, %s1213_s15 }
  0x24   : > { %p1315_p3 = por %p1418_p0, %p34_p12  ;;  %s981_s9 = smul.u32 48, %s148_s7 }
  0x25   : > { %p1321_p5 = pnand %p1005_p2, %p36_p13  ;;  %s1328_s21 = scalar_lea.hbm %s1406_s0, %s982_s8 }
  0x26   : > { %s1419_s6 = scalar_select %p1315_p3, 1, 0 }
  0x27   : > { %s152_s22 = scalar_lea.vmem [#allocation2], %s981_s9  ;;  %s149_s25 = scalar_lea.sflag [#allocation3], %s148_s7 }
  0x28   : > { %s160_s23 = sshll.u32 %s152_s22, 4  ;;  %s1117_s26 = scalar_lea.hbm %s1328_s21, 768  ;;  %s161_s23 = int_to_ptr.vmem [resolvable:$true] %s160_s23 }
  0x29   : > { %p1118_p11 = scmp.ne.s32.totalorder %s1328_s21, %s1117_s26  ;;  %p1119_p7 = pneg %p1321_p5 }
  0x2a   : > { %s1122_s29 = scalar_lea.hbm %s1406_s0, 1536  ;;  %p1123_p10 = scmp.lt.s32.totalorder %s1328_s21, %s1406_s0 }
  0x2b   : > { %p1120_p9 = pnand %p1119_p7, %p1118_p11  ;;  %p1124_p2 = scmp.lt.s32.totalorder %s1122_s29, %s1117_s26 }
  0x2d   : > { %p1121_p12 = pneg %p1120_p9  ;;  %p1125_p13 = por %p1124_p2, %p1123_p10 }
  0x2f   : > { %p1126_p0 = pnand %p1125_p13, %p1121_p12 }
  0x31   : > { %1129 = shalt.err (!%p1126_p0)
}
  0x32   : > { %s1130_s8 = scalar_lea.vmem %s161_s23, 768  ;;  %s1218_s7 = smov [#allocation2]  }
  0x33   : > { %p1131_p1 = scmp.ne.s32.totalorder %s161_s23, %s1130_s8  ;;  %s1135_s9 = sshll.u32 %s1218_s7, 4  ;;  %s1136_s9 = int_to_ptr.vmem [resolvable:$false] %s1135_s9 }
  0x34   : > { %s1137_s11 = scalar_lea.vmem %s1136_s9, 1536  ;;  %p1138_p11 = scmp.lt.s32.totalorder %s161_s23, %s1136_s9 }
  0x35   : > { %p1133_p6 = pnand %p1131_p1, %p1119_p7  ;;  %p1139_p9 = scmp.lt.s32.totalorder %s1137_s11, %s1130_s8 }
  0x37   : > { %p1134_p3 = pneg %p1133_p6  ;;  %p1140_p4 = por %p1139_p9, %p1138_p11 }
  0x39   : > { %p1141_p8 = pnand %p1140_p4, %p1134_p3 }
  0x3b   : > { %1144 = shalt.err (!%p1141_p8)
}
  0x3c   : > { %999 = dma.hbm_to_vmem [thread:$0]  (!%p1321_p5), %s1328_s21, 768, %s161_s23, %s149_s25  }
  0x3d   : > { %p1421_p12 = scmp.ne.s32.totalorder %s1416_s20, 0 }
  0x3e   : > { %s1347_s17 = sand.u32 (!%p1421_p12), 1, %s1205_s13   ;;  %p1422_p1 = scmp.ne.s32.totalorder (!%p1421_p12), %s1414_s18, 0 }
  0x3f   : > { %169 = sbr.rel (%p1421_p12) target bundleno = 351 (0x15f), region = 32  ;;  %s172_s26 = scalar_lea.sflag (!%p1421_p12), [#allocation3], %s1347_s17 }
  0x40   : > { %s983_s22 = smul.u32 (!%p1421_p12), 48, %s1347_s17 }
  0x42   : > { %s1351_s27 = scalar_lea.vmem (!%p1421_p12), [#allocation2], %s983_s22 }
  0x44   : > { %1188 = dma.done.wait (%p1422_p1), %s172_s26, 768  }
  0x45   : > { %1190 = vsyncadd (%p1422_p1), %s172_s26, 4294966528  ;;  %p1423_p4 = scmp.eq.s32.totalorder %s1261_s16, 0 }
  0x47   : > { %1192 = dma.done.wait (%p1423_p4), [#allocation6], 6144   ;;  %p1424_p6 = pmov %p1423_p4 }
  0x48   : > { %v1043_v0 = vld [vmem:[#allocation5 + $0x78] sm:$0xff]   ;;  %v1047_v4 = vld [vmem:[#allocation5 + $0x70] sm:$0xff]   ;;  %v1051_v8 = vld [vmem:[#allocation5 + $0x68] sm:$0xff]   ;;  %s862_s10 = sshll.u32 %s1347_s17, 3  ;;  %s912_s21 = sshll.u32 %s1261_s16, 7 }
  0x49   : > { %1194 = vsyncadd (%p1424_p6), [#allocation6], 4294961152  ;;  %v1044_v1 = vld [vmem:[#allocation5 + $0x38] sm:$0xff]   ;;  %915 = vmatprep.subr.bf16.mxu0 %v1043_v0  ;;  %v1048_v5 = vld [vmem:[#allocation5 + $0x30] sm:$0xff]   ;;  %s201_s23 = scalar_lea.vmem [#allocation7], %s862_s10  ;;  %s773_s30 = scalar_lea.hbm %s1409_s3, %s912_s21 }
  0x4a   : > { %v1045_v2 = vld [vmem:[#allocation5 + $0xf8] sm:$0xff]   ;;  %916 = vmatpush3.bf16.msra.mxu0 %v1044_v1  ;;  %v1049_v6 = vld [vmem:[#allocation5 + $0xf0] sm:$0xff]   ;;  %v1052_v9 = vld [vmem:[#allocation5 + $0x28] sm:$0xff]   ;;  %s775_s25 = sshll.u32 %s201_s23, 4  ;;  %s762_s4 = scalar_lea.sflag [#allocation4], %s1347_s17  ;;  %s776_s25 = int_to_ptr.vmem [resolvable:$true] %s775_s25 }
  0x4b   : > { %v1046_v3 = vld [vmem:[#allocation5 + $0xb8] sm:$0xff]   ;;  %937 = vmatprep.subr.bf16.mxu1 %v1045_v2  ;;  %917 = vmatprep.subr.bf16.mxu0 %v1047_v4  ;;  %v1050_v7 = vld [vmem:[#allocation5 + $0xb0] sm:$0xff]   ;;  %v1053_v10 = vld [vmem:[#allocation5 + $0xe8] sm:$0xff]   ;;  %s1145_s8 = scalar_lea.vmem %s776_s25, 128  ;;  %p1425_p3 = scmp.ne.s32.totalorder %s1419_s6, 0 }
  0x4c   : > { %938 = vmatpush3.bf16.msra.mxu1 %v1046_v3  ;;  %v1054_v11 = vld [vmem:[#allocation5 + $0xa8] sm:$0xff]   ;;  %v1055_v12 = vld [vmem:[#allocation5 + $0x60] sm:$0xff]   ;;  %v1059_v16 = vld [vmem:[#allocation5 + $0x58] sm:$0xff]   ;;  %p1146_p8 = scmp.ne.s32.totalorder %s776_s25, %s1145_s8  ;;  %s1219_s7 = smov [#allocation7]  }
  0x4d   : > { %939 = vmatprep.subr.bf16.mxu1 %v1049_v6  ;;  %v1056_v13 = vld [vmem:[#allocation5 + $0x20] sm:$0xff]   ;;  %v1060_v17 = vld [vmem:[#allocation5 + $0x18] sm:$0xff]   ;;  %v1063_v20 = vld [vmem:[#allocation5 + $0x50] sm:$0xff]   ;;  %s1149_s9 = sshll.u32 %s1219_s7, 4  ;;  %s1150_s9 = int_to_ptr.vmem [resolvable:$false] %s1149_s9 }
  0x4e   : > { %918 = vmatpush3.bf16.msra.mxu0 %v1048_v5  ;;  %v1057_v14 = vld [vmem:[#allocation5 + $0xe0] sm:$0xff]   ;;  %v1061_v18 = vld [vmem:[#allocation5 + $0xd8] sm:$0xff]   ;;  %v1064_v21 = vld [vmem:[#allocation5 + $0x10] sm:$0xff]   ;;  %p1147_p5 = pnand %p1146_p8, %p1425_p3  ;;  %s1151_s16 = scalar_lea.vmem %s1150_s9, 256 }
  0x4f   : > { %919 = vmatprep.subr.bf16.mxu0 %v1051_v8  ;;  %v1058_v15 = vld [vmem:[#allocation5 + $0xa0] sm:$0xff]   ;;  %v1062_v19 = vld [vmem:[#allocation5 + $0x98] sm:$0xff]   ;;  %v1065_v22 = vld [vmem:[#allocation5 + $0xd0] sm:$0xff]   ;;  %p1152_p10 = scmp.lt.s32.totalorder %s776_s25, %s1150_s9  ;;  %p1153_p2 = scmp.lt.s32.totalorder %s1151_s16, %s1145_s8 }
  0x50   : > { %940 = vmatpush3.bf16.msra.mxu1 %v1050_v7  ;;  %v1066_v23 = vld [vmem:[#allocation5 + $0x90] sm:$0xff]   ;;  %v1067_v24 = vld [vmem:[#allocation5 + $0x48] sm:$0xff]   ;;  %v1071_v28 = vld [vmem:[#allocation5 + $0x40] sm:$0xff]   ;;  %p1148_p7 = pneg %p1147_p5 }
  0x51   : > { %941 = vmatprep.subr.bf16.mxu1 %v1053_v10  ;;  %v1068_v25 = vld [vmem:[#allocation5 + $0x8] sm:$0xff]   ;;  %v1072_v29 = vld [vmem:[#allocation5] sm:$0xff]   ;;  %v1075_v36 = vld [vmem:[#allocation5 + $0x178] sm:$0xff]   ;;  %p1154_p13 = por %p1153_p2, %p1152_p10 }
  0x52   : > { %920 = vmatpush3.bf16.msra.mxu0 %v1052_v9  ;;  %v1069_v26 = vld [vmem:[#allocation5 + $0xc8] sm:$0xff]   ;;  %v1073_v30 = vld [vmem:[#allocation5 + $0xc0] sm:$0xff]   ;;  %v1076_v60 = vld [vmem:[#allocation5 + $0x138] sm:$0xff]  }
  0x53   : > { %921 = vmatprep.subr.bf16.mxu0 %v1055_v12  ;;  %v1070_v27 = vld [vmem:[#allocation5 + $0x88] sm:$0xff]   ;;  %v1074_v33 = vld [vmem:[#allocation5 + $0x80] sm:$0xff]   ;;  %v1077_v63 = vld [vmem:[#allocation5 + $0x170] sm:$0xff]   ;;  %p1155_p0 = pnand %p1154_p13, %p1148_p7 }
  0x54   : > { %942 = vmatpush3.bf16.msra.mxu1 %v1054_v11  ;;  %v204_v31 = vld [vmem:[%s1351_s27 + $0x8] sm:$0xff]  ;;  %v203_v34 = vld [vmem:[%s1351_s27] sm:$0xff]  ;;  %v206_v37 = vld [vmem:[%s1351_s27 + $0x18] sm:$0xff] }
  0x55   : > { %943 = vmatprep.subr.bf16.mxu1 %v1057_v14  ;;  %v215_v32 = vrot.slane %v204_v31, 4  ;;  %v209_v35 = vrot.slane %v203_v34, 4  ;;  %v227_v39 = vrot.slane %v206_v37, 4  ;;  %v205_v41 = vld [vmem:[%s1351_s27 + $0x10] sm:$0xff]  ;;  %v1079_v4 = vld [vmem:[#allocation5 + $0x168] sm:$0xff]   ;;  %v207_v6 = vld [vmem:[%s1351_s27 + $0x20] sm:$0xff] }
  0x56   : > { %922 = vmatpush3.bf16.msra.mxu0 %v1056_v13  ;;  %v221_v44 = vrot.slane %v205_v41, 4  ;;  %v1078_v3 = vld [vmem:[#allocation5 + $0x130] sm:$0xff]   ;;  %v208_v5 = vld [vmem:[%s1351_s27 + $0x28] sm:$0xff]  ;;  %v233_v8 = vrot.slane %v207_v6, 4  ;;  %v1081_v11 = vld [vmem:[#allocation5 + $0x160] sm:$0xff]  }
  0x57   : > { %923 = vmatprep.subr.bf16.mxu0 %v1059_v16  ;;  %v216_v38 = vadd.f32 %v215_v32, %v204_v31  ;;  %v210_v40 = vadd.f32 %v209_v35, %v203_v34  ;;  %v228_v43 = vadd.f32 %v227_v39, %v206_v37  ;;  %v239_v7 = vrot.slane %v208_v5, 4  ;;  %v1080_v9 = vld [vmem:[#allocation5 + $0x128] sm:$0xff]   ;;  %v1082_v14 = vld [vmem:[#allocation5 + $0x120] sm:$0xff]   ;;  %v1083_v16 = vld [vmem:[#allocation5 + $0x158] sm:$0xff]  }
  0x58   : > { %944 = vmatpush3.bf16.msra.mxu1 %v1058_v15  ;;  %v222_v48 = vadd.f32 %v221_v44, %v205_v41  ;;  %v234_v13 = vadd.f32 %v233_v8, %v207_v6  ;;  %v756_v41 = vlaneseq }
  0x59   : > { %945 = vmatprep.subr.bf16.mxu1 %v1061_v18  ;;  %v217_v42 = vrot.slane %v216_v38, 2  ;;  %v211_v45 = vrot.slane %v210_v40, 2  ;;  %v229_v47 = vrot.slane %v228_v43, 2  ;;  %v240_v10 = vadd.f32 %v239_v7, %v208_v5 }
  0x5a   : > { %924 = vmatpush3.bf16.msra.mxu0 %v1060_v17  ;;  %v223_v52 = vrot.slane %v222_v48, 2  ;;  %v235_v18 = vrot.slane %v234_v13, 2 }
  0x5b   : > { %925 = vmatprep.subr.bf16.mxu0 %v1063_v20  ;;  %v218_v46 = vadd.f32 %v217_v42, %v216_v38  ;;  %v212_v49 = vadd.f32 %v211_v45, %v210_v40  ;;  %v230_v51 = vadd.f32 %v229_v47, %v228_v43  ;;  %v241_v12 = vrot.slane %v240_v10, 2  ;;  %v347_v42 = vld [vmem:[%s1408_s2] sm:$0x1] }
  0x5c   : > { %946 = vmatpush3.bf16.msra.mxu1 %v1062_v19  ;;  %v224_v56 = vadd.f32 %v223_v52, %v222_v48  ;;  %v1084_v19 = vld [vmem:[#allocation5 + $0x118] sm:$0xff]   ;;  %v757_v45 = vshrl.u32 %v756_v41, 7 }
  0x5d   : > { %947 = vmatprep.subr.bf16.mxu1 %v1065_v22  ;;  %v219_v50 = vrot.slane %v218_v46, 1  ;;  %v213_v53 = vrot.slane %v212_v49, 1  ;;  %v231_v55 = vrot.slane %v230_v51, 1  ;;  %v242_v15 = vadd.f32 %v241_v12, %v240_v10 }
  0x5e   : > { %926 = vmatpush3.bf16.msra.mxu0 %v1064_v21  ;;  %v225_v61 = vrot.slane %v224_v56, 1  ;;  %v1085_v21 = vld [vmem:[#allocation5 + $0x150] sm:$0xff]  }
  0x5f   : > { %927 = vmatprep.subr.bf16.mxu0 %v1067_v24  ;;  %v220_v54 = vadd.f32 %v219_v50, %v218_v46  ;;  %v214_v57 = vadd.f32 %v213_v53, %v212_v49  ;;  %v232_v59 = vadd.f32 %v231_v55, %v230_v51  ;;  %v243_v17 = vrot.slane %v242_v15, 1  ;;  %v1086_v24 = vld [vmem:[#allocation5 + $0x110] sm:$0xff]  }
  0x60   : > { %948 = vmatpush3.bf16.msra.mxu1 %v1066_v23  ;;  %v226_v1 = vadd.f32 %v225_v61, %v224_v56  ;;  %v236_v23 = vadd.f32 %v235_v18, %v234_v13  ;;  %v758_v50 = vsub.s32 0, %v757_v45 }
  0x61   : > { %949 = vmatprep.subr.bf16.mxu1 %v1069_v26  ;;  %v246_v58 = vpack.c.bf16 %v220_v54, %v220_v54  ;;  %v245_v62 = vpack.c.bf16 %v214_v57, %v214_v57  ;;  %v248_v0 = vpack.c.bf16 %v232_v59, %v232_v59  ;;  %v244_v20 = vadd.f32 %v243_v17, %v242_v15 }
  0x62   : > { %928 = vmatpush3.bf16.msra.mxu0 %v1068_v25  ;;  %v247_v2 = vpack.c.bf16 %v226_v1, %v226_v1  ;;  %v1087_v25 = vld [vmem:[#allocation5 + $0x148] sm:$0xff]   ;;  %v237_v26 = vrot.slane %v236_v23, 1 }
  0x63   : > { %929 = vmatprep.subr.bf16.mxu0 %v1071_v28  ;;  %668 = vmatprep.mubr.bf16.mxu0 %v246_v58  ;;  %v250_v22 = vpack.c.bf16 %v244_v20, %v244_v20  ;;  %v1089_v28 = vld [vmem:[#allocation5 + $0x140] sm:$0xff]  }
  0x64   : > { %950 = vmatpush3.bf16.msra.mxu1 %v1070_v27  ;;  %708 = vmatprep.mubr.bf16.mxu1 %v248_v0  ;;  %v1088_v27 = vld [vmem:[#allocation5 + $0x108] sm:$0xff]  }
  0x65   : > { %951 = vmatprep.subr.bf16.mxu1 %v1073_v30  ;;  %v1090_v30 = vld [vmem:[#allocation5 + $0x100] sm:$0xff]  }
  0x66   : > { %930 = vmatpush3.bf16.msra.mxu0 %v1072_v29  ;;  %v238_v29 = vadd.f32 %v237_v26, %v236_v23 }
  0x67   : > { %959 = vmatprep.subr.bf16.mxu0 %v1075_v36 }
  0x68   : > { %952 = vmatpush3.bf16.msra.mxu1 %v1074_v33  ;;  %v249_v31 = vpack.c.bf16 %v238_v29, %v238_v29 }
  0x69   : > { %669 = vmatmul.mubr.bf16.vlgmr.msra.gmra.mxu0 %v245_v62 }
  0x6a   : > { %960 = vmatpush3.bf16.msra.mxu0 %v1076_v60  ;;  %748 = vmatprep.mubr.bf16.mxu0 %v250_v22 }
  0x6b   : > { %961 = vmatprep.subr.bf16.mxu0 %v1077_v63  ;;  %709 = vmatmul.mubr.bf16.vlgmr.msra.gmra.mxu1 %v247_v2 }
  0x6e   : > { %962 = vmatpush3.bf16.msra.mxu0 %v1078_v3 }
  0x6f   : > { %963 = vmatprep.subr.bf16.mxu0 %v1079_v4 }
  0x72   : > { %964 = vmatpush3.bf16.msra.mxu0 %v1080_v9 }
  0x73   : > { %965 = vmatprep.subr.bf16.mxu0 %v1081_v11 }
  0x76   : > { %966 = vmatpush3.bf16.msra.mxu0 %v1082_v14 }
  0x77   : > { %967 = vmatprep.subr.bf16.mxu0 %v1083_v16 }
  0x7a   : > { %968 = vmatpush3.bf16.msra.mxu0 %v1084_v19 }
  0x7b   : > { %969 = vmatprep.subr.bf16.mxu0 %v1085_v21 }
  0x7e   : > { %970 = vmatpush3.bf16.msra.mxu0 %v1086_v24 }
  0x7f   : > { %971 = vmatprep.subr.bf16.mxu0 %v1087_v25 }
  0x82   : > { %972 = vmatpush3.bf16.msra.mxu0 %v1088_v27 }
  0x83   : > { %973 = vmatprep.subr.bf16.mxu0 %v1089_v28 }
  0x86   : > { %974 = vmatpush3.bf16.msra.mxu0 %v1090_v30 }
  0x89   : > { %749 = vmatmul.mubr.bf16.vlgmr.msra.gmra.mxu0 %v249_v31 }
 0x129   : > { %v931_v32 = vpop.f32.mrf.mxu0 }
 0x12b   : > { %v932_v33 = vpop.f32.mrf.mxu0  ;;  %v953_v34 = vpop.f32.mrf.mxu1 }
 0x12c   : > { %v933_v40 = vadd.f32 %v932_v33, %v931_v32 }
 0x12d   : > { %v934_v35 = vpop.f32.mrf.mxu0  ;;  %v954_v36 = vpop.f32.mrf.mxu1 }
 0x12e   : > { %v671_v43 = vadd.f32 %v933_v40, %v347_v42  ;;  %v955_v44 = vadd.f32 %v954_v36, %v953_v34 }
 0x12f   : > { %v935_v37 = vpop.f32.mrf.mxu0  ;;  %v956_v38 = vpop.f32.mrf.mxu1 }
 0x130   : > { %v711_v48 = vadd.f32 %v955_v44, %v671_v43 }
 0x131   : > { %v957_v39 = vpop.f32.mrf.mxu1 }
 0x149   : > { %v975_v46 = vpop.f32.mrf.mxu0 }
 0x14b   : > { %v976_v47 = vpop.f32.mrf.mxu0 }
 0x14c   : > { %v977_v49 = vadd.f32 %v976_v47, %v975_v46 }
 0x14d   : > { %v978_v51 = vpop.f32.mrf.mxu0 }
 0x14e   : > { %v751_v52 = vadd.f32 %v977_v49, %v711_v48 }
 0x14f   : > { %v979_v53 = vpop.f32.mrf.mxu0 }
 0x150   : > { %v759_v54 = vrot.slane %v751_v52, %v758_v50 }
 0x152   : > { %760 = vst [vmem:[%s201_s23] sm:$0xff] %v759_v54 }
 0x153   : > { %1158 = shalt.err (!%p1155_p0)
}
 0x154   : > { %s1159_s11 = scalar_lea.hbm %s773_s30, 128  ;;  %s1163_s26 = scalar_lea.hbm %s1409_s3, 256 }
 0x155   : > { %p1160_p11 = scmp.ne.s32.totalorder %s773_s30, %s1159_s11  ;;  %p1164_p1 = scmp.lt.s32.totalorder %s773_s30, %s1409_s3 }
 0x156   : > { %p1165_p4 = scmp.lt.s32.totalorder %s1163_s26, %s1159_s11 }
 0x157   : > { %p1161_p9 = pnand %p1160_p11, %p1425_p3 }
 0x158   : > { %p1166_p6 = por %p1165_p4, %p1164_p1 }
 0x159   : > { %p1162_p12 = pneg %p1161_p9 }
 0x15b   : > { %p1167_p8 = pnand %p1166_p6, %p1162_p12 }
 0x15d   : > { %1170 = shalt.err (!%p1167_p8)
}
 0x15e   : > { %990 = dma.vmem_to_hbm [thread:$0]  (%p1425_p3), %s776_s25, 128, %s773_s30, %s762_s4  }
 0x15f PF: > { %s787_s20 = sand.u32 1, %s1201_s12   ;;  %p1426_p5 = scmp.ne.s32.totalorder %s1415_s19, 0 }
 0x160   : > { %p1427_p7 = scmp.ge.s32.totalorder %s1213_s15, 2  ;;  %s788_s10 = scalar_lea.sflag [#allocation4], %s787_s20 }
 0x162   : > { %p1001_p10 = pnand %p1427_p7, %p1426_p5 }
 0x164   : > { %p1002_p2 = pneg %p1001_p10 }
 0x166   : > { %1196 = dma.done.wait (%p1002_p2), %s788_s10, 128  }
 0x167   : > { %1198 = vsyncadd (%p1002_p2), %s788_s10, 4294967168  ;;  %p17_p13 = scmp.ge.s32.totalorder %s1294_s24, 4   ;;  %s1428_s12 = smov %s1205_s13 }
 0x168   : > { %s1429_s13 = smov %s1209_s14  ;;  %s1430_s14 = smov %s1311_s5 }
 0x169   : > { %s1431_s15 = smov %s1294_s24  ;;  %19 = sbr.rel (!%p17_p13) target bundleno = 6 (0x6), region = 81 }
 0x16e   :  { %793 = vsyncpa [#allocation3], 1 }
 0x16f   :  { %795 = vsyncpa [#allocation3 + $0x1], 1 }
 0x170   :  { %796 = vsyncpa [#allocation6], 1 }
 0x171   :  { %797 = vsyncpa [#allocation4], 1 }
 0x172   :  { %799 = vsyncpa [#allocation4 + $0x1], 1 }

</bundles_post_ra>
